<compile_context>
chip_gen: v7x
topology: tpu7x:2x2x1
jax: 0.10.0
libtpu: 0.0.40
codegen_flags: <defaults>
</compile_context>

<pallas_src>
import math
from functools import partial

import jax
import jax.numpy as jnp
from jax.experimental import pallas as pl
from jax.experimental.pallas import tpu as pltpu


_VMEM_LIMIT_BYTES = 32 * 1024 * 1024   # safe scoped limit on v5e/v6e/v7x
_VMEM_BUDGET_BYTES = 20 * 1024 * 1024  # target per-step footprint (with headroom)


# ---------------------------------------------------------------------------
# Tiling heuristics
# ---------------------------------------------------------------------------
def _pick_block_q(sq: int) -> int:
    for cand in (256, 128, 64, 32, 16, 8):
        if sq % cand == 0:
            return cand
    return sq  # full axis (always a legal block shape)


def _vmem_estimate_bytes(block_q, g, hd, sq, sk, qm):
    f32 = 4
    qm_block = block_q if qm == sq else 1
    per_step = (block_q * g * hd          # q block
                + 2 * sk * g * hd         # k + v blocks
                + block_q * g * hd        # out block
                + g * block_q * sk        # probs block
                + qm_block * sk)          # mask block
    # double-buffered pipeline buffers + in-kernel score/exp temporaries
    return 2 * per_step * f32 + 4 * block_q * sk * f32


def _pick_head_group(nh, hd, block_q, sq, sk, qm):
    # g must keep the last block dim legal: either all heads (full H) or a
    # lane-dense multiple of 128.
    valid = [g for g in range(1, nh + 1)
             if nh % g == 0 and (g == nh or (g * hd) % 128 == 0)]
    fitting = [g for g in valid
               if _vmem_estimate_bytes(block_q, g, hd, sq, sk, qm)
               <= _VMEM_BUDGET_BYTES]
    if fitting:
        return max(fitting)
    # TODO(synk): for extremely long Sk even one head group exceeds the budget;
    # that would need an Sk-tiled (flash-style) pass, but returning probs
    # forces the full [Sq, Sk] writeback anyway.
    return min(valid)


# ---------------------------------------------------------------------------
# Pallas kernel: one (batch, head-group, q-block) per grid point.
# ---------------------------------------------------------------------------
def _make_attention_kernel(g, hd, block_q, sq, sk, scale, matmul_dtype):
    def kernel(q_ref, k_ref, v_ref, mask_ref, out_ref, probs_ref):
        qi = pl.program_id(2)

        # Causal mask for this block of query rows (matches torch.tril bias).
        row = jax.lax.broadcasted_iota(jnp.int32, (block_q, sk), 0) + qi * block_q
        col = jax.lax.broadcasted_iota(jnp.int32, (block_q, sk), 1)
        causal = col <= (row + (sk - sq))

        # Additive mask block: [1, Sk] or [block_q, Sk]; broadcasts over rows.
        add_mask = mask_ref[...].astype(jnp.float32)

        outs = []
        for h in range(g):
            lo = h * hd
            hi = lo + hd
            q_h = q_ref[:, lo:hi].astype(jnp.float32) * scale   # [bq, hd]
            k_h = k_ref[:, lo:hi].astype(jnp.float32)           # [Sk, hd]
            v_h = v_ref[:, lo:hi].astype(jnp.float32)           # [Sk, hd]

            if matmul_dtype is not None:
                q_h = q_h.astype(matmul_dtype)
                k_h = k_h.astype(matmul_dtype)

            # scores = q_h @ k_h^T  (contract head_dim)
            s = jax.lax.dot_general(
                q_h, k_h, (((1,), (1,)), ((), ())),
                preferred_element_type=jnp.float32)             # [bq, Sk]

            s = jnp.where(causal, s, jnp.float32(-10000.0))
            s = s + add_mask

            m = jnp.max(s, axis=-1, keepdims=True)
            e = jnp.exp(s - m)
            denom = jnp.sum(e, axis=-1, keepdims=True)
            p = e * pl.reciprocal(denom, approx=True)           # EUP, not VALU

            probs_ref[h] = p.astype(probs_ref.dtype)

            if matmul_dtype is not None:
                p_mm = p.astype(matmul_dtype)
                v_mm = v_h.astype(matmul_dtype)
            else:
                p_mm, v_mm = p, v_h
            outs.append(jnp.dot(p_mm, v_mm,
                                preferred_element_type=jnp.float32))  # [bq, hd]

        # Single lane-dense store of the whole head-group slab.
        out_ref[...] = jnp.concatenate(outs, axis=-1).astype(out_ref.dtype)

    return kernel


# ---------------------------------------------------------------------------
# Wrapper equivalent to SimpleAttentionCore.forward
# ---------------------------------------------------------------------------
def simple_attention_core(query, key, value, attention_mask, num_attention_heads,
                          probs_dtype=None, matmul_dtype=None):
    """
    :param query: [B, Sq, hidden]
    :param key:   [B, Sk, hidden]
    :param value: [B, Sk, hidden]
    :param attention_mask: additive mask broadcastable to [B, (1|nh), Sq|1, Sk]
                           or [B, Sq|1, Sk], or None
    :param probs_dtype: dtype for the returned probs (e.g. jnp.bfloat16 to halve
                        the dominant HBM writeback); defaults to query.dtype
    :param matmul_dtype: optional MXU input dtype (e.g. jnp.bfloat16 on v6e/v7x);
                         accumulation stays f32.  Default None = full f32.
    :return: (output [B, Sq, hidden], probs [B, num_heads, Sq, Sk])
    """
    B, Sq, H = query.shape
    Sk = key.shape[1]
    nh = num_attention_heads
    assert H % nh == 0
    hd = H // nh

    # --- normalize additive mask to [B, qm, Sk] with qm in {1, Sq} ------------
    if attention_mask is None:
        mask = jnp.zeros((B, 1, Sk), jnp.float32)
    else:
        m = jnp.asarray(attention_mask, jnp.float32)
        if m.ndim == 4:
            assert m.shape[1] == 1, "per-head additive masks are not supported"
            m = m[:, 0]
        while m.ndim < 3:
            m = m[None]
        qm = m.shape[1] if m.shape[1] in (1, Sq) else Sq
        mask = jnp.broadcast_to(m, (B, qm, Sk)).astype(jnp.float32)
    qm = mask.shape[1]

    # --- tiling ---------------------------------------------------------------
    block_q = _pick_block_q(Sq)
    g = _pick_head_group(nh, hd, block_q, Sq, Sk, qm)
    num_hg = nh // g
    num_qb = Sq // block_q
    scale = 1.0 / math.sqrt(hd)
    probs_dtype = probs_dtype if probs_dtype is not None else query.dtype

    kernel = _make_attention_kernel(g, hd, block_q, Sq, Sk, scale, matmul_dtype)

    in_specs = [
        pl.BlockSpec((None, block_q, g * hd), lambda b, hg, qi: (b, qi, hg)),  # q
        pl.BlockSpec((None, Sk, g * hd), lambda b, hg, qi: (b, 0, hg)),        # k
        pl.BlockSpec((None, Sk, g * hd), lambda b, hg, qi: (b, 0, hg)),        # v
    ]
    if qm == 1:
        in_specs.append(pl.BlockSpec((None, 1, Sk), lambda b, hg, qi: (b, 0, 0)))
    else:
        in_specs.append(pl.BlockSpec((None, block_q, Sk), lambda b, hg, qi: (b, qi, 0)))

    out_specs = [
        pl.BlockSpec((None, block_q, g * hd), lambda b, hg, qi: (b, qi, hg)),      # out
        pl.BlockSpec((None, g, block_q, Sk), lambda b, hg, qi: (b, hg, qi, 0)),    # probs
    ]
    out_shape = (
        jax.ShapeDtypeStruct((B, Sq, H), query.dtype),
        jax.ShapeDtypeStruct((B, nh, Sq, Sk), probs_dtype),
    )

    probs_bytes = B * nh * Sq * Sk * jnp.dtype(probs_dtype).itemsize
    io_bytes = 4 * (2 * B * Sq * H + 2 * B * Sk * H + mask.size) + probs_bytes
    cost = pl.CostEstimate(
        flops=4 * B * nh * Sq * Sk * hd,
        transcendentals=B * nh * Sq * Sk,
        bytes_accessed=io_bytes,
    )

    out, probs = pl.pallas_call(
        kernel,
        grid=(B, num_hg, num_qb),
        in_specs=in_specs,
        out_specs=out_specs,
        out_shape=out_shape,
        compiler_params=pltpu.CompilerParams(
            dimension_semantics=("parallel", "parallel", "parallel"),
            vmem_limit_bytes=_VMEM_LIMIT_BYTES,
        ),
        cost_estimate=cost,
    )(query, key, value, mask)

    return out, probs


# ---------------------------------------------------------------------------
# Pure-JAX reference (mirror of the PyTorch forward) for a silent sanity check.
# ---------------------------------------------------------------------------
def _reference(query, key, value, attention_mask, nh):
    B, Sq, H = query.shape
    Sk = key.shape[1]
    hd = H // nh
    qh = query.reshape(B, Sq, nh, hd).transpose(0, 2, 1, 3)
    kh = key.reshape(B, Sk, nh, hd).transpose(0, 2, 1, 3)
    vh = value.reshape(B, Sk, nh, hd).transpose(0, 2, 1, 3)
    scores = jnp.einsum("bhqd,bhkd->bhqk", qh, kh) / math.sqrt(hd)
    row = jnp.arange(Sq)[:, None]
    col = jnp.arange(Sk)[None, :]
    causal = col <= (row + (Sk - Sq))
    scores = jnp.where(causal[None, None], scores, jnp.float32(-10000.0))
    if attention_mask is not None:
        scores = scores + jnp.asarray(attention_mask, scores.dtype)
    probs = jax.nn.softmax(scores, axis=-1)
    out = jnp.einsum("bhqk,bhkd->bhqd", probs, vh)
    out = out.transpose(0, 2, 1, 3).reshape(B, Sq, H)
    return out, probs


if __name__ == "__main__":
    B, S, hidden, nh = 2, 8, 32, 4      # head_dim = 8

    rng = jax.random.PRNGKey(0)
    kq, kk, kv, km = jax.random.split(rng, 4)
    query = jax.random.normal(kq, (B, S, hidden), dtype=jnp.float32)
    key_t = jax.random.normal(kk, (B, S, hidden), dtype=jnp.float32)
    value = jax.random.normal(kv, (B, S, hidden), dtype=jnp.float32)
    # canonical "extended" additive attention mask: [B, 1, 1, Sk]
    attention_mask = 0.1 * jax.random.normal(km, (B, 1, 1, S), dtype=jnp.float32)

    out, probs = simple_attention_core(query, key_t, value, attention_mask, nh)
    jax.block_until_ready((out, probs))

    ref_out, ref_probs = _reference(query, key_t, value, attention_mask, nh)
    # tolerance relaxed slightly for the approx-EUP reciprocal in the softmax
    assert jnp.allclose(out, ref_out, atol=2e-3, rtol=2e-3), "output mismatch"
    assert jnp.allclose(probs, ref_probs, atol=2e-3, rtol=2e-3), "probs mismatch"

    print("KERNEL_OK")
</pallas_src>

<mosaic_0001>
module attributes {stable_mosaic.version = 11 : i64} {
  func.func @kernel(%arg0: i32, %arg1: i32, %arg2: i32, %arg3: memref<1x8x32xf32, #tpu.memory_space<vmem>>, %arg4: memref<1x8x32xf32, #tpu.memory_space<vmem>>, %arg5: memref<1x8x32xf32, #tpu.memory_space<vmem>>, %arg6: memref<1x1x8xf32, #tpu.memory_space<vmem>>, %arg7: memref<1x8x32xf32, #tpu.memory_space<vmem>>, %arg8: memref<1x4x8x8xf32, #tpu.memory_space<vmem>>) attributes {dimension_semantics = [#tpu.dimension_semantics<parallel>, #tpu.dimension_semantics<parallel>, #tpu.dimension_semantics<parallel>], iteration_bounds = array<i64: 2, 1, 1>, scalar_prefetch = 0 : i64, scratch_operands = 0 : i64, tpu.core_type = #tpu.core_type<tc>, window_params = [{transform_indices = @transform_0, window_bounds = array<i64: 1, 8, 32>}, {transform_indices = @transform_1, window_bounds = array<i64: 1, 8, 32>}, {transform_indices = @transform_2, window_bounds = array<i64: 1, 8, 32>}, {transform_indices = @transform_3, window_bounds = array<i64: 1, 1, 8>}, {transform_indices = @transform_4, window_bounds = array<i64: 1, 8, 32>}, {transform_indices = @transform_5, window_bounds = array<i64: 1, 4, 8, 8>}]} {
    %0 = tpu.iota {dimensions = array<i32: 0>} : vector<8x8xi32>
    %c8_i32 = arith.constant 8 : i32
    %1 = arith.muli %arg2, %c8_i32 : i32
    %2 = vector.broadcast %1 : i32 to vector<8x8xi32>
    %3 = arith.addi %0, %2 : vector<8x8xi32>
    %4 = tpu.iota {dimensions = array<i32: 1>} : vector<8x8xi32>
    %c0_i32 = arith.constant 0 : i32
    %5 = vector.broadcast %c0_i32 : i32 to vector<8x8xi32>
    %6 = arith.addi %3, %5 : vector<8x8xi32>
    %7 = arith.cmpi sle, %4, %6 : vector<8x8xi32>
    %c0 = arith.constant 0 : index
    %c0_0 = arith.constant 0 : index
    %c0_1 = arith.constant 0 : index
    %8 = vector.load %arg6[%c0, %c0_0, %c0_1] : memref<1x1x8xf32, #tpu.memory_space<vmem>>, vector<1x1x8xf32>
    %9 = vector.shape_cast %8 : vector<1x1x8xf32> to vector<1x8xf32>
    %c0_2 = arith.constant 0 : index
    %c0_3 = arith.constant 0 : index
    %c0_4 = arith.constant 0 : index
    %10 = vector.load %arg3[%c0_2, %c0_3, %c0_4] : memref<1x8x32xf32, #tpu.memory_space<vmem>>, vector<1x8x8xf32>
    %11 = vector.shape_cast %10 : vector<1x8x8xf32> to vector<8x8xf32>
    %cst = arith.constant 0.353553385 : f32
    %12 = vector.broadcast %cst : f32 to vector<8x8xf32>
    %13 = arith.mulf %11, %12 : vector<8x8xf32>
    %c0_5 = arith.constant 0 : index
    %c0_6 = arith.constant 0 : index
    %c0_7 = arith.constant 0 : index
    %14 = vector.load %arg4[%c0_5, %c0_6, %c0_7] : memref<1x8x32xf32, #tpu.memory_space<vmem>>, vector<1x8x8xf32>
    %15 = vector.shape_cast %14 : vector<1x8x8xf32> to vector<8x8xf32>
    %c0_8 = arith.constant 0 : index
    %c0_9 = arith.constant 0 : index
    %c0_10 = arith.constant 0 : index
    %16 = vector.load %arg5[%c0_8, %c0_9, %c0_10] : memref<1x8x32xf32, #tpu.memory_space<vmem>>, vector<1x8x8xf32>
    %17 = vector.shape_cast %16 : vector<1x8x8xf32> to vector<8x8xf32>
    %cst_11 = arith.constant dense<0.000000e+00> : vector<8x8xf32>
    %18 = tpu.matmul %13, %15, %cst_11 {dimension_numbers = #tpu.dot_dimension_numbers<[1], [1], [0], [0], [0, 0, 1, 0], [], []>} : vector<8x8xf32>, vector<8x8xf32>, vector<8x8xf32> -> vector<8x8xf32>
    %cst_12 = arith.constant -1.000000e+04 : f32
    %19 = vector.broadcast %cst_12 : f32 to vector<8x8xf32>
    %20 = arith.select %7, %18, %19 : vector<8x8xi1>, vector<8x8xf32>
    %21 = vector.broadcast %9 : vector<1x8xf32> to vector<8x8xf32>
    %22 = arith.addf %20, %21 : vector<8x8xf32>
    %cst_13 = arith.constant dense<0xFF800000> : vector<8xf32>
    %23 = vector.multi_reduction <maximumf>, %22, %cst_13 [1] : vector<8x8xf32> to vector<8xf32>
    %24 = vector.shape_cast %23 : vector<8xf32> to vector<8x1xf32>
    %25 = vector.broadcast %24 : vector<8x1xf32> to vector<8x8xf32>
    %26 = arith.subf %22, %25 : vector<8x8xf32>
    %27 = math.exp %26 : vector<8x8xf32>
    %cst_14 = arith.constant dense<0.000000e+00> : vector<8xf32>
    %28 = vector.multi_reduction <add>, %27, %cst_14 [1] : vector<8x8xf32> to vector<8xf32>
    %29 = vector.shape_cast %28 : vector<8xf32> to vector<8x1xf32>
    %30 = tpu.reciprocal %29 {approx = true} : vector<8x1xf32> -> vector<8x1xf32>
    %31 = vector.broadcast %30 : vector<8x1xf32> to vector<8x8xf32>
    %32 = arith.mulf %27, %31 : vector<8x8xf32>
    %c0_15 = arith.constant 0 : index
    %c0_16 = arith.constant 0 : index
    %c0_17 = arith.constant 0 : index
    %c0_18 = arith.constant 0 : index
    %33 = vector.load %arg8[%c0_15, %c0_16, %c0_17, %c0_18] : memref<1x4x8x8xf32, #tpu.memory_space<vmem>>, vector<1x1x8x8xf32>
    %34 = vector.shape_cast %33 : vector<1x1x8x8xf32> to vector<8x8xf32>
    %35 = vector.shape_cast %32 : vector<8x8xf32> to vector<1x1x8x8xf32>
    tpu.vector_store %arg8[%c0_15, %c0_16, %c0_17, %c0_18], %35 {strides = array<i32>} : memref<1x4x8x8xf32, #tpu.memory_space<vmem>>, vector<1x1x8x8xf32>,
    %cst_19 = arith.constant dense<0.000000e+00> : vector<8x8xf32>
    %36 = tpu.matmul %32, %17, %cst_19 {dimension_numbers = #tpu.dot_dimension_numbers<[1], [0], [0], [1], [0, 0, 1, 1], [], []>} : vector<8x8xf32>, vector<8x8xf32>, vector<8x8xf32> -> vector<8x8xf32>
    %c0_20 = arith.constant 0 : index
    %c0_21 = arith.constant 0 : index
    %c8 = arith.constant 8 : index
    %37 = vector.load %arg3[%c0_20, %c0_21, %c8] : memref<1x8x32xf32, #tpu.memory_space<vmem>>, vector<1x8x8xf32>
    %38 = vector.shape_cast %37 : vector<1x8x8xf32> to vector<8x8xf32>
    %cst_22 = arith.constant 0.353553385 : f32
    %39 = vector.broadcast %cst_22 : f32 to vector<8x8xf32>
    %40 = arith.mulf %38, %39 : vector<8x8xf32>
    %c0_23 = arith.constant 0 : index
    %c0_24 = arith.constant 0 : index
    %c8_25 = arith.constant 8 : index
    %41 = vector.load %arg4[%c0_23, %c0_24, %c8_25] : memref<1x8x32xf32, #tpu.memory_space<vmem>>, vector<1x8x8xf32>
    %42 = vector.shape_cast %41 : vector<1x8x8xf32> to vector<8x8xf32>
    %c0_26 = arith.constant 0 : index
    %c0_27 = arith.constant 0 : index
    %c8_28 = arith.constant 8 : index
    %43 = vector.load %arg5[%c0_26, %c0_27, %c8_28] : memref<1x8x32xf32, #tpu.memory_space<vmem>>, vector<1x8x8xf32>
    %44 = vector.shape_cast %43 : vector<1x8x8xf32> to vector<8x8xf32>
    %cst_29 = arith.constant dense<0.000000e+00> : vector<8x8xf32>
    %45 = tpu.matmul %40, %42, %cst_29 {dimension_numbers = #tpu.dot_dimension_numbers<[1], [1], [0], [0], [0, 0, 1, 0], [], []>} : vector<8x8xf32>, vector<8x8xf32>, vector<8x8xf32> -> vector<8x8xf32>
    %cst_30 = arith.constant -1.000000e+04 : f32
    %46 = vector.broadcast %cst_30 : f32 to vector<8x8xf32>
    %47 = arith.select %7, %45, %46 : vector<8x8xi1>, vector<8x8xf32>
    %48 = vector.broadcast %9 : vector<1x8xf32> to vector<8x8xf32>
    %49 = arith.addf %47, %48 : vector<8x8xf32>
    %cst_31 = arith.constant dense<0xFF800000> : vector<8xf32>
    %50 = vector.multi_reduction <maximumf>, %49, %cst_31 [1] : vector<8x8xf32> to vector<8xf32>
    %51 = vector.shape_cast %50 : vector<8xf32> to vector<8x1xf32>
    %52 = vector.broadcast %51 : vector<8x1xf32> to vector<8x8xf32>
    %53 = arith.subf %49, %52 : vector<8x8xf32>
    %54 = math.exp %53 : vector<8x8xf32>
    %cst_32 = arith.constant dense<0.000000e+00> : vector<8xf32>
    %55 = vector.multi_reduction <add>, %54, %cst_32 [1] : vector<8x8xf32> to vector<8xf32>
    %56 = vector.shape_cast %55 : vector<8xf32> to vector<8x1xf32>
    %57 = tpu.reciprocal %56 {approx = true} : vector<8x1xf32> -> vector<8x1xf32>
    %58 = vector.broadcast %57 : vector<8x1xf32> to vector<8x8xf32>
    %59 = arith.mulf %54, %58 : vector<8x8xf32>
    %c0_33 = arith.constant 0 : index
    %c1 = arith.constant 1 : index
    %c0_34 = arith.constant 0 : index
    %c0_35 = arith.constant 0 : index
    %60 = vector.load %arg8[%c0_33, %c1, %c0_34, %c0_35] : memref<1x4x8x8xf32, #tpu.memory_space<vmem>>, vector<1x1x8x8xf32>
    %61 = vector.shape_cast %60 : vector<1x1x8x8xf32> to vector<8x8xf32>
    %62 = vector.shape_cast %59 : vector<8x8xf32> to vector<1x1x8x8xf32>
    tpu.vector_store %arg8[%c0_33, %c1, %c0_34, %c0_35], %62 {strides = array<i32>} : memref<1x4x8x8xf32, #tpu.memory_space<vmem>>, vector<1x1x8x8xf32>,
    %cst_36 = arith.constant dense<0.000000e+00> : vector<8x8xf32>
    %63 = tpu.matmul %59, %44, %cst_36 {dimension_numbers = #tpu.dot_dimension_numbers<[1], [0], [0], [1], [0, 0, 1, 1], [], []>} : vector<8x8xf32>, vector<8x8xf32>, vector<8x8xf32> -> vector<8x8xf32>
    %c0_37 = arith.constant 0 : index
    %c0_38 = arith.constant 0 : index
    %c16 = arith.constant 16 : index
    %64 = vector.load %arg3[%c0_37, %c0_38, %c16] : memref<1x8x32xf32, #tpu.memory_space<vmem>>, vector<1x8x8xf32>
    %65 = vector.shape_cast %64 : vector<1x8x8xf32> to vector<8x8xf32>
    %cst_39 = arith.constant 0.353553385 : f32
    %66 = vector.broadcast %cst_39 : f32 to vector<8x8xf32>
    %67 = arith.mulf %65, %66 : vector<8x8xf32>
    %c0_40 = arith.constant 0 : index
    %c0_41 = arith.constant 0 : index
    %c16_42 = arith.constant 16 : index
    %68 = vector.load %arg4[%c0_40, %c0_41, %c16_42] : memref<1x8x32xf32, #tpu.memory_space<vmem>>, vector<1x8x8xf32>
    %69 = vector.shape_cast %68 : vector<1x8x8xf32> to vector<8x8xf32>
    %c0_43 = arith.constant 0 : index
    %c0_44 = arith.constant 0 : index
    %c16_45 = arith.constant 16 : index
    %70 = vector.load %arg5[%c0_43, %c0_44, %c16_45] : memref<1x8x32xf32, #tpu.memory_space<vmem>>, vector<1x8x8xf32>
    %71 = vector.shape_cast %70 : vector<1x8x8xf32> to vector<8x8xf32>
    %cst_46 = arith.constant dense<0.000000e+00> : vector<8x8xf32>
    %72 = tpu.matmul %67, %69, %cst_46 {dimension_numbers = #tpu.dot_dimension_numbers<[1], [1], [0], [0], [0, 0, 1, 0], [], []>} : vector<8x8xf32>, vector<8x8xf32>, vector<8x8xf32> -> vector<8x8xf32>
    %cst_47 = arith.constant -1.000000e+04 : f32
    %73 = vector.broadcast %cst_47 : f32 to vector<8x8xf32>
    %74 = arith.select %7, %72, %73 : vector<8x8xi1>, vector<8x8xf32>
    %75 = vector.broadcast %9 : vector<1x8xf32> to vector<8x8xf32>
    %76 = arith.addf %74, %75 : vector<8x8xf32>
    %cst_48 = arith.constant dense<0xFF800000> : vector<8xf32>
    %77 = vector.multi_reduction <maximumf>, %76, %cst_48 [1] : vector<8x8xf32> to vector<8xf32>
    %78 = vector.shape_cast %77 : vector<8xf32> to vector<8x1xf32>
    %79 = vector.broadcast %78 : vector<8x1xf32> to vector<8x8xf32>
    %80 = arith.subf %76, %79 : vector<8x8xf32>
    %81 = math.exp %80 : vector<8x8xf32>
    %cst_49 = arith.constant dense<0.000000e+00> : vector<8xf32>
    %82 = vector.multi_reduction <add>, %81, %cst_49 [1] : vector<8x8xf32> to vector<8xf32>
    %83 = vector.shape_cast %82 : vector<8xf32> to vector<8x1xf32>
    %84 = tpu.reciprocal %83 {approx = true} : vector<8x1xf32> -> vector<8x1xf32>
    %85 = vector.broadcast %84 : vector<8x1xf32> to vector<8x8xf32>
    %86 = arith.mulf %81, %85 : vector<8x8xf32>
    %c0_50 = arith.constant 0 : index
    %c2 = arith.constant 2 : index
    %c0_51 = arith.constant 0 : index
    %c0_52 = arith.constant 0 : index
    %87 = vector.load %arg8[%c0_50, %c2, %c0_51, %c0_52] : memref<1x4x8x8xf32, #tpu.memory_space<vmem>>, vector<1x1x8x8xf32>
    %88 = vector.shape_cast %87 : vector<1x1x8x8xf32> to vector<8x8xf32>
    %89 = vector.shape_cast %86 : vector<8x8xf32> to vector<1x1x8x8xf32>
    tpu.vector_store %arg8[%c0_50, %c2, %c0_51, %c0_52], %89 {strides = array<i32>} : memref<1x4x8x8xf32, #tpu.memory_space<vmem>>, vector<1x1x8x8xf32>,
    %cst_53 = arith.constant dense<0.000000e+00> : vector<8x8xf32>
    %90 = tpu.matmul %86, %71, %cst_53 {dimension_numbers = #tpu.dot_dimension_numbers<[1], [0], [0], [1], [0, 0, 1, 1], [], []>} : vector<8x8xf32>, vector<8x8xf32>, vector<8x8xf32> -> vector<8x8xf32>
    %c0_54 = arith.constant 0 : index
    %c0_55 = arith.constant 0 : index
    %c24 = arith.constant 24 : index
    %91 = vector.load %arg3[%c0_54, %c0_55, %c24] : memref<1x8x32xf32, #tpu.memory_space<vmem>>, vector<1x8x8xf32>
    %92 = vector.shape_cast %91 : vector<1x8x8xf32> to vector<8x8xf32>
    %cst_56 = arith.constant 0.353553385 : f32
    %93 = vector.broadcast %cst_56 : f32 to vector<8x8xf32>
    %94 = arith.mulf %92, %93 : vector<8x8xf32>
    %c0_57 = arith.constant 0 : index
    %c0_58 = arith.constant 0 : index
    %c24_59 = arith.constant 24 : index
    %95 = vector.load %arg4[%c0_57, %c0_58, %c24_59] : memref<1x8x32xf32, #tpu.memory_space<vmem>>, vector<1x8x8xf32>
    %96 = vector.shape_cast %95 : vector<1x8x8xf32> to vector<8x8xf32>
    %c0_60 = arith.constant 0 : index
    %c0_61 = arith.constant 0 : index
    %c24_62 = arith.constant 24 : index
    %97 = vector.load %arg5[%c0_60, %c0_61, %c24_62] : memref<1x8x32xf32, #tpu.memory_space<vmem>>, vector<1x8x8xf32>
    %98 = vector.shape_cast %97 : vector<1x8x8xf32> to vector<8x8xf32>
    %cst_63 = arith.constant dense<0.000000e+00> : vector<8x8xf32>
    %99 = tpu.matmul %94, %96, %cst_63 {dimension_numbers = #tpu.dot_dimension_numbers<[1], [1], [0], [0], [0, 0, 1, 0], [], []>} : vector<8x8xf32>, vector<8x8xf32>, vector<8x8xf32> -> vector<8x8xf32>
    %cst_64 = arith.constant -1.000000e+04 : f32
    %100 = vector.broadcast %cst_64 : f32 to vector<8x8xf32>
    %101 = arith.select %7, %99, %100 : vector<8x8xi1>, vector<8x8xf32>
    %102 = vector.broadcast %9 : vector<1x8xf32> to vector<8x8xf32>
    %103 = arith.addf %101, %102 : vector<8x8xf32>
    %cst_65 = arith.constant dense<0xFF800000> : vector<8xf32>
    %104 = vector.multi_reduction <maximumf>, %103, %cst_65 [1] : vector<8x8xf32> to vector<8xf32>
    %105 = vector.shape_cast %104 : vector<8xf32> to vector<8x1xf32>
    %106 = vector.broadcast %105 : vector<8x1xf32> to vector<8x8xf32>
    %107 = arith.subf %103, %106 : vector<8x8xf32>
    %108 = math.exp %107 : vector<8x8xf32>
    %cst_66 = arith.constant dense<0.000000e+00> : vector<8xf32>
    %109 = vector.multi_reduction <add>, %108, %cst_66 [1] : vector<8x8xf32> to vector<8xf32>
    %110 = vector.shape_cast %109 : vector<8xf32> to vector<8x1xf32>
    %111 = tpu.reciprocal %110 {approx = true} : vector<8x1xf32> -> vector<8x1xf32>
    %112 = vector.broadcast %111 : vector<8x1xf32> to vector<8x8xf32>
    %113 = arith.mulf %108, %112 : vector<8x8xf32>
    %c0_67 = arith.constant 0 : index
    %c3 = arith.constant 3 : index
    %c0_68 = arith.constant 0 : index
    %c0_69 = arith.constant 0 : index
    %114 = vector.load %arg8[%c0_67, %c3, %c0_68, %c0_69] : memref<1x4x8x8xf32, #tpu.memory_space<vmem>>, vector<1x1x8x8xf32>
    %115 = vector.shape_cast %114 : vector<1x1x8x8xf32> to vector<8x8xf32>
    %116 = vector.shape_cast %113 : vector<8x8xf32> to vector<1x1x8x8xf32>
    tpu.vector_store %arg8[%c0_67, %c3, %c0_68, %c0_69], %116 {strides = array<i32>} : memref<1x4x8x8xf32, #tpu.memory_space<vmem>>, vector<1x1x8x8xf32>,
    %cst_70 = arith.constant dense<0.000000e+00> : vector<8x8xf32>
    %117 = tpu.matmul %113, %98, %cst_70 {dimension_numbers = #tpu.dot_dimension_numbers<[1], [0], [0], [1], [0, 0, 1, 1], [], []>} : vector<8x8xf32>, vector<8x8xf32>, vector<8x8xf32> -> vector<8x8xf32>
    %118 = tpu.concatenate %36, %63, %90, %117 in 1 : vector<8x8xf32>, vector<8x8xf32>, vector<8x8xf32>, vector<8x8xf32> -> vector<8x32xf32>
    %c0_71 = arith.constant 0 : index
    %c0_72 = arith.constant 0 : index
    %c0_73 = arith.constant 0 : index
    %119 = vector.load %arg7[%c0_71, %c0_72, %c0_73] : memref<1x8x32xf32, #tpu.memory_space<vmem>>, vector<1x8x32xf32>
    %120 = vector.shape_cast %119 : vector<1x8x32xf32> to vector<8x32xf32>
    %121 = vector.shape_cast %118 : vector<8x32xf32> to vector<1x8x32xf32>
    tpu.vector_store %arg7[%c0_71, %c0_72, %c0_73], %121 {strides = array<i32>} : memref<1x8x32xf32, #tpu.memory_space<vmem>>, vector<1x8x32xf32>,
    return
  }
  func.func @transform_0(%arg0: i32, %arg1: i32, %arg2: i32) -> (i32, i32, i32) {
    %c0_i32 = arith.constant 0 : i32
    return %arg0, %arg2, %arg1 : i32, i32, i32
  }
  func.func @transform_1(%arg0: i32, %arg1: i32, %arg2: i32) -> (i32, i32, i32) {
    %c0_i32 = arith.constant 0 : i32
    %c0_i32_0 = arith.constant 0 : i32
    return %arg0, %c0_i32, %arg1 : i32, i32, i32
  }
  func.func @transform_2(%arg0: i32, %arg1: i32, %arg2: i32) -> (i32, i32, i32) {
    %c0_i32 = arith.constant 0 : i32
    %c0_i32_0 = arith.constant 0 : i32
    return %arg0, %c0_i32, %arg1 : i32, i32, i32
  }
  func.func @transform_3(%arg0: i32, %arg1: i32, %arg2: i32) -> (i32, i32, i32) {
    %c0_i32 = arith.constant 0 : i32
    %c0_i32_0 = arith.constant 0 : i32
    %c0_i32_1 = arith.constant 0 : i32
    return %arg0, %c0_i32, %c0_i32_0 : i32, i32, i32
  }
  func.func @transform_4(%arg0: i32, %arg1: i32, %arg2: i32) -> (i32, i32, i32) {
    %c0_i32 = arith.constant 0 : i32
    return %arg0, %arg2, %arg1 : i32, i32, i32
  }
  func.func @transform_5(%arg0: i32, %arg1: i32, %arg2: i32) -> (i32, i32, i32, i32) {
    %c0_i32 = arith.constant 0 : i32
    %c0_i32_0 = arith.constant 0 : i32
    return %arg0, %arg1, %arg2, %c0_i32 : i32, i32, i32, i32
  }
}

</mosaic_0001>

<bundles_post_ra>
// kernel: tpu_custom_call.1
= control target key start
LH: loop header
LB: loop body
LE: loop exit
PB: predicated region body
PF: predicated region fallthrough
CT: control target
= control target key end

     0   :  { %s2175_s0 = inlined_call_operand.hbm [shape: f32[2,8,32], index: 0, kind: input, shape index: {}]   ;;  %s2176_s1 = inlined_call_operand.hbm [shape: f32[2,8,32], index: 1, kind: input, shape index: {}]   ;;  %s2177_s2 = inlined_call_operand.hbm [shape: f32[2,8,32], index: 2, kind: input, shape index: {}]   ;;  %s2178_s3 = inlined_call_operand.vmem [shape: f32[2,1,8], index: 3, kind: input, shape index: {}]   ;;  %s2179_s4 = inlined_call_operand.hbm [shape: f32[2,8,32], index: 4, kind: output, shape index: {0}]   ;;  %s2180_s5 = inlined_call_operand.hbm [shape: f32[2,4,8,8], index: 5, kind: output, shape index: {1}]  }
   0x1   :  { %2190 = sst [smem:[#allocation20_spill]] %s2176_s1 }
   0x2   :  { %11 = vsyncpa [#allocation3], 0 }
   0x3   :  { %13 = vsyncpa [#allocation3 + $0x1], 0 }
   0x4   :  { %14 = vsyncpa [#allocation6], 0 }
   0x5   :  { %16 = vsyncpa [#allocation6 + $0x1], 0 }
   0x6   :  { %17 = vsyncpa [#allocation4], 0 }
   0x7   :  { %19 = vsyncpa [#allocation4 + $0x1], 0 }
   0x8   :  { %20 = vsyncpa [#allocation10], 0 }
   0x9   :  { %22 = vsyncpa [#allocation10 + $0x1], 0  ;;  %s1773_s18 = smov 0   ;;  %s1775_s19 = smov 0  }
   0xa   :  { %s1777_s20 = smov 0   ;;  %s1779_s21 = smov 0  }
   0xb   :  { %s1781_s22 = smov 0   ;;  %s1783_s23 = smov 0  }
   0xc LB: > { %2191 = sst [smem:[#allocation15_spill]] %s1723_s22  ;;  %s1804_s24 = sadd.s32 4294967295, %s1727_s23   ;;  %s1727_s23 = sphi %s1783_s23, %s28_s23   ;;  %s1723_s22 = sphi %s1781_s22, %s2217_s22   ;;  %s1719_s21 = sphi %s1779_s21, %s2216_s21   ;;  %s1715_s20 = sphi %s1777_s20, %s2220_s20   ;;  %s1711_s19 = sphi %s1775_s19, %s2219_s19   ;;  %s1707_s18 = sphi %s1773_s18, %s2218_s18  }
   0xd   : > { %2192 = sst [smem:[#allocation16_spill]] %s1727_s23  ;;  %s1322_s25 = sadd.s32 4294967294, %s1727_s23  }
   0xe   : > { %s47_s26 = sadd.s32 1, %s1723_s22  ;;  %s58_s27 = sadd.s32 1, %s1715_s20 }
   0xf   : > { %p49_p0 = scmp.ge.s32.totalorder %s47_s26, 2  ;;  %p65_p1 = scmp.ne.s32.totalorder %s1715_s20, %s1711_s19 }
  0x10   : > { %p66_p2 = scmp.eq.s32.totalorder %s1727_s23, 0  ;;  %p71_p3 = scmp.ne.s32.totalorder %s1711_s19, %s1707_s18 }
  0x11   : > { %s2222_s26 = smov (%p49_p0, %s47_s26), 0  ;;  %p72_p5 = scmp.eq.s32.totalorder %s1804_s24, 0 }
  0x12   : > { %2193 = sst [smem:[#allocation17_spill]] %s2222_s26  ;;  %p1816_p4 = por %p66_p2, %p65_p1 }
  0x13   : > { %s51_s29 = ssub.s32 %s1723_s22, %s2222_s26  ;;  %p181_p6 = scmp.eq.s32.totalorder %s1804_s24, 1 }
  0x14   : > { %p56_p7 = scmp.eq.s32.totalorder %s51_s29, 0  ;;  %p1824_p8 = por %p72_p5, %p71_p3 }
  0x15   : > { %p1828_p9 = por %p181_p6, %p65_p1  ;;  %p187_p10 = scmp.eq.s32.totalorder %s1322_s25, 1 }
  0x16   : > { %s2195_s30 = scalar_select %p1824_p8, 1, 0 }
  0x17   : > { %s2196_s6 = scalar_select %p1828_p9, 1, 0 }
  0x18   : > { %s1833_s7 = scalar_select %p56_p7, %s1715_s20, %s58_s27  }
  0x19   : > { %p1835_p11 = por %p187_p10, %p71_p3  ;;  %p1444_p13 = scmp.lt.s32.totalorder %s1727_s23, 2 }
  0x1a   : > { %2197 = sst [smem:[#allocation18_spill]] %s1833_s7  ;;  %s2181_s9 = sand.u32 1, %s1715_s20  }
  0x1b   : > { %s2198_s8 = scalar_select %p1835_p11, 1, 0 }
  0x1c   : > { %s1844_s10 = sshll.u32 %s2181_s9, 3  ;;  %s1847_s11 = sshll.u32 %s1723_s22, 7 }
  0x1d   : > { %2199 = sst [smem:[#allocation19_spill]] %s2198_s8  ;;  %p1851_p0 = pnand %p1444_p13, %p1816_p4 }
  0x1e   : > { %s257_s13 = sand.u32 1, %s1727_s23   ;;  %s2201_s1 = sld [smem:[#allocation20_spill]] }
  0x1f   : > { %s2200_s12 = scalar_select %p1851_p0, 1, 0 }
  0x20   : > { %s261_s17 = scalar_lea.vmem [#allocation5], %s1844_s10  ;;  %s1867_s27 = scalar_lea.sflag [#allocation6], %s257_s13 }
  0x21   : > { %s269_s25 = sshll.u32 %s261_s17, 4  ;;  %p1873_p4 = pneg %p1851_p0  ;;  %s1864_s25 = int_to_ptr.vmem [resolvable:$true] %s269_s25 }
  0x24   : > { %s1860_s16 = scalar_lea.hbm %s2201_s1, %s1847_s11  ;;  %s1524_s17 = scalar_lea.hbm %s2201_s1, 256 }
  0x25   : > { %s1519_s28 = scalar_lea.hbm %s1860_s16, 128  ;;  %p1525_p7 = scmp.lt.u32.totalorder %s1860_s16, %s2201_s1 }
  0x26   : > { %p1520_p3 = scmp.ne.s32.totalorder %s1860_s16, %s1519_s28  ;;  %p1526_p10 = scmp.lt.u32.totalorder %s1524_s17, %s1519_s28 }
  0x27   : > { %p1528_p12 = scmp.lt.u32.totalorder %s1519_s28, %s1860_s16 }
  0x28   : > { %p1522_p5 = pnand %p1873_p4, %p1520_p3  ;;  %p1527_p13 = por %p1526_p10, %p1525_p7 }
  0x2a   : > { %p1523_p6 = pneg %p1522_p5  ;;  %p1529_p1 = por %p1528_p12, %p1527_p13 }
  0x2c   : > { %p1530_p2 = pnand %p1529_p1, %p1523_p6 }
  0x2e   : > { %1533 = shalt.err (!%p1530_p2)
}
  0x2f   : > { %s1534_s13 = scalar_lea.vmem %s1864_s25, 128  ;;  %s1729_s14 = smov [#allocation5]  }
  0x30   : > { %p1535_p3 = scmp.ne.s32.totalorder %s1864_s25, %s1534_s13  ;;  %s1539_s15 = sshll.u32 %s1729_s14, 4  ;;  %s1540_s15 = int_to_ptr.vmem [resolvable:$false] %s1539_s15 }
  0x31   : > { %s1541_s26 = scalar_lea.vmem %s1540_s15, 256  ;;  %p1542_p9 = scmp.lt.s32.totalorder %s1864_s25, %s1540_s15 }
  0x32   : > { %p1537_p5 = pnand %p1535_p3, %p1873_p4  ;;  %p1543_p8 = scmp.lt.s32.totalorder %s1541_s26, %s1534_s13 }
  0x34   : > { %p1538_p11 = pneg %p1537_p5  ;;  %p1544_p7 = por %p1543_p8, %p1542_p9 }
  0x36   : > { %p1545_p10 = pnand %p1544_p7, %p1538_p11 }
  0x38   : > { %1548 = shalt.err (!%p1545_p10)
}
  0x39   : > { %1433 = dma.hbm_to_vmem [thread:$0]  (!%p1851_p0), %s1860_s16, 128, %s1864_s25, %s1867_s27  }
  0x3a   : > { %p2203_p12 = scmp.lt.s32.totalorder %s1727_s23, 3  ;;  %p2204_p1 = scmp.ge.s32.totalorder %s1727_s23, 1 }
  0x3b   : > { %s1909_s13 = scalar_lea.hbm %s2175_s0, %s1847_s11  ;;  %s241_s14 = scalar_lea.vmem [#allocation2], %s1844_s10 }
  0x3c   : > { %p1901_p2 = pnand %p2204_p1, %p2203_p12  ;;  %s250_s15 = sshll.u32 %s241_s14, 4  ;;  %s1912_s15 = int_to_ptr.vmem [resolvable:$true] %s250_s15 }
  0x3d   : > { %s1918_s26 = scalar_lea.hbm %s2177_s2, %s1847_s11  ;;  %s2206_s1 = sand.u32 1, %s1715_s20  }
  0x3e   : > { %s2205_s9 = scalar_select %p1901_p2, 1, 0 }
  0x3f   : > { %s238_s22 = scalar_lea.sflag [#allocation3], %s2206_s1  ;;  %s1549_s7 = scalar_lea.hbm %s1909_s13, 128 }
  0x40   : > { %p1550_p8 = scmp.ne.s32.totalorder %s1909_s13, %s1549_s7  ;;  %s1554_s23 = scalar_lea.hbm %s2175_s0, 256 }
  0x41   : > { %p1555_p6 = scmp.lt.u32.totalorder %s1909_s13, %s2175_s0  ;;  %p1556_p13 = scmp.lt.u32.totalorder %s1554_s23, %s1549_s7 }
  0x42   : > { %p1552_p9 = pnand %p1550_p8, %p1873_p4  ;;  %p1558_p5 = scmp.lt.u32.totalorder %s1549_s7, %s1909_s13 }
  0x43   : > { %p1557_p3 = por %p1556_p13, %p1555_p6 }
  0x44   : > { %p1553_p11 = pneg %p1552_p9 }
  0x45   : > { %p1559_p7 = por %p1558_p5, %p1557_p3 }
  0x47   : > { %p1560_p10 = pnand %p1559_p7, %p1553_p11 }
  0x49   : > { %1563 = shalt.err (!%p1560_p10)
}
  0x4a   : > { %s1564_s1 = scalar_lea.vmem %s1912_s15, 128  ;;  %s1730_s11 = smov [#allocation2]  }
  0x4b   : > { %p1565_p12 = scmp.ne.s32.totalorder %s1912_s15, %s1564_s1  ;;  %s1569_s16 = sshll.u32 %s1730_s11, 4  ;;  %s1570_s16 = int_to_ptr.vmem [resolvable:$false] %s1569_s16 }
  0x4c   : > { %s1571_s8 = scalar_lea.vmem %s1570_s16, 256  ;;  %p1572_p9 = scmp.lt.s32.totalorder %s1912_s15, %s1570_s16 }
  0x4d   : > { %p1567_p1 = pnand %p1565_p12, %p1873_p4  ;;  %p1573_p2 = scmp.lt.s32.totalorder %s1571_s8, %s1564_s1 }
  0x4f   : > { %p1568_p8 = pneg %p1567_p1  ;;  %p1574_p6 = por %p1573_p2, %p1572_p9 }
  0x51   : > { %p1575_p13 = pnand %p1574_p6, %p1568_p8 }
  0x53   : > { %1578 = shalt.err (!%p1575_p13)
}
  0x54   : > { %1430 = dma.hbm_to_vmem [thread:$0]  (!%p1851_p0), %s1909_s13, 128, %s1912_s15, %s238_s22  }
  0x55   : > { %s280_s23 = scalar_lea.vmem [#allocation7], %s1844_s10  ;;  %s1579_s25 = scalar_lea.hbm %s1918_s26, 128 }
  0x56   : > { %s288_s7 = sshll.u32 %s280_s23, 4  ;;  %p1580_p11 = scmp.ne.s32.totalorder %s1918_s26, %s1579_s25  ;;  %s289_s7 = int_to_ptr.vmem [resolvable:$true] %s288_s7 }
  0x57   : > { %s1584_s14 = scalar_lea.hbm %s2177_s2, 256  ;;  %p1585_p5 = scmp.lt.u32.totalorder %s1918_s26, %s2177_s2 }
  0x58   : > { %p1582_p2 = pnand %p1580_p11, %p1873_p4  ;;  %p1586_p7 = scmp.lt.u32.totalorder %s1584_s14, %s1579_s25 }
  0x59   : > { %p1588_p12 = scmp.lt.u32.totalorder %s1579_s25, %s1918_s26 }
  0x5a   : > { %p1583_p3 = pneg %p1582_p2  ;;  %p1587_p10 = por %p1586_p7, %p1585_p5 }
  0x5c   : > { %p1589_p1 = por %p1588_p12, %p1587_p10 }
  0x5e   : > { %p1590_p8 = pnand %p1589_p1, %p1583_p3 }
  0x60   : > { %1593 = shalt.err (!%p1590_p8)
}
  0x61   : > { %s1594_s22 = scalar_lea.vmem %s289_s7, 128  ;;  %s1731_s10 = smov [#allocation7]  }
  0x62   : > { %p1595_p9 = scmp.ne.s32.totalorder %s289_s7, %s1594_s22  ;;  %s1599_s13 = sshll.u32 %s1731_s10, 4  ;;  %s1600_s13 = int_to_ptr.vmem [resolvable:$false] %s1599_s13 }
  0x63   : > { %s1601_s15 = scalar_lea.vmem %s1600_s13, 256  ;;  %p1602_p11 = scmp.lt.s32.totalorder %s289_s7, %s1600_s13 }
  0x64   : > { %p1597_p6 = pnand %p1595_p9, %p1873_p4  ;;  %p1603_p2 = scmp.lt.s32.totalorder %s1601_s15, %s1594_s22 }
  0x66   : > { %p1598_p13 = pneg %p1597_p6  ;;  %p1604_p0 = por %p1603_p2, %p1602_p11 }
  0x68   : > { %p1605_p5 = pnand %p1604_p0, %p1598_p13 }
  0x6a   : > { %1608 = shalt.err (!%p1605_p5)
}
  0x6b   : > { %p2207_p7 = scmp.ne.s32.totalorder %s2200_s12, 0  ;;  %p2208_p3 = scmp.ne.s32.totalorder %s2205_s9, 0 }
  0x6c   : > { %s1965_s29 = sand.u32 (!%p2208_p3), 1, %s1711_s19   ;;  %p2209_p0 = scmp.ne.s32.totalorder (!%p2208_p3), %s2195_s30, 0 }
  0x6d   : > { %1436 = dma.hbm_to_vmem [thread:$0]  (!%p2207_p7), %s1918_s26, 128, %s289_s7, %s1867_s27  }
  0x6e   : > { %303 = sbr.rel (%p2208_p3) target bundleno = 1584 (0x630), region = 36  ;;  %s1968_s16 = sshll.u32 (!%p2208_p3), %s1965_s29, 3 }
  0x6f   : > { %s306_s8 = scalar_lea.sflag (!%p2208_p3), [#allocation3], %s1965_s29  ;;  %s309_s23 = scalar_lea.vmem (!%p2208_p3), [#allocation2], %s1968_s16 }
  0x75   : > { %1690 = dma.done.wait (%p2209_p0), %s306_s8, 128  }
  0x76   : > { %1692 = vsyncadd (%p2209_p0), %s306_s8, 4294967168  ;;  %s314_s12 = sand.u32 1, %s1804_s24   ;;  %s318_s9 = scalar_lea.vmem [#allocation5], %s1968_s16 }
  0x77   : > { %s315_s27 = scalar_lea.sflag [#allocation6], %s314_s12 }
  0x78   : > { %1694 = dma.done.wait (%p2209_p0), %s315_s27, 256  }
  0x79   : > { %1696 = vsyncadd (%p2209_p0), %s315_s27, 4294967040  ;;  %v1732_v0 = vmov 0.0   ;;  %vm1733_vm0 = vmmov 0   ;;  %vm389_vm1 = vcmask 64512   ;;  %v387_v1 = vld [vmem:[%s318_s9] sm:$0xff]  ;;  %v385_v2 = vld [vmem:[%s309_s23] sm:$0xff]  ;;  %v376_v4 = vlaneseq }
  0x7a   : > { %1377 = vmatprep.subr.mxu0 %v1732_v0  ;;  %1379 = vmatprep.mubr.msk.f32.mxu0 %vm1733_vm0, %v1732_v0  ;;  %v386_v3 = vmul.f32 0.35355338, %v385_v2  ;;  %p372_p4 = scmp.lt.s32.totalorder %s1719_s21, 1  ;;  %s1734_s25 = smov 120  }
  0x7b   : > { %1382 = vmatprep.subr.mxu1 %v1732_v0  ;;  %1384 = vmatprep.mubr.msk.f32.mxu1 %vm1733_vm0, %v1732_v0  ;;  %v1995_v5 = vshrl.u32 %v376_v4, 7  ;;  %v1997_v6 = vand.u32 127, %v376_v4  ;;  %s1735_s28 = smov 112   ;;  %s1736_s17 = smov 104  }
  0x7c   : > { %1378 = vmatpush3.xpose.msk.msra.mxu0 %vm389_vm1, %v387_v1  ;;  %s373_s24 = scalar_select %p372_p4, %s1719_s21, 1  ;;  %567 = vrot.lane.b32.xlu1 %v387_v1, %s1734_s25 }
  0x7d   : > { %1392 = vmatprep.subr.mxu0 %v1732_v0  ;;  %vm383_vm2 = vcmp.le.s32.totalorder %v1997_v6, %v1995_v5  ;;  %s327_s14 = scalar_lea.vmem [#allocation7], %s1968_s16  ;;  %s1336_s1 = sshll.u32 %s1965_s29, 5 }
  0x7e   : > { %s374_s7 = scalar_lea.vmem %s2178_s3, %s373_s24  ;;  %v2018_v18 = vld [vmem:[%s327_s14] sm:$0xff]  ;;  %s2024_s11 = scalar_lea.vmem [#allocation9], %s1336_s1 }
  0x7f   : > { %1380 = vmatmul.mubr.msk.f32.vlgmr.msra.gmra.mrb[0].mxu0 %vm389_vm1, %v386_v3  ;;  %v2004_v7 = vld [vmem:[%s374_s7] ss:$0 sm:$0xff]  ;;  %1383 = vmatpush3.msra.mxu1 %v2018_v18  ;;  %s1737_s22 = smov 8   ;;  %s1738_s10 = smov 16  }
  0x80   : > { %1394 = vmatprep.mubr.msk.f32.mxu0 %vm1733_vm0, %v1732_v0  ;;  %564 = vrot.lane.b32.xlu1 %v386_v3, %s1734_s25  ;;  %s1360_s13 = sshll.u32 %s1719_s21, 9  ;;  %s1143_s15 = sshll.u32 %s2024_s11, 4  ;;  %s2092_s15 = int_to_ptr.vmem [resolvable:$true] %s1143_s15 }
  0x81   : > { %1387 = vmatprep.subr.mxu1 %v1732_v0  ;;  %s2090_s12 = scalar_lea.hbm %s2180_s5, %s1360_s13  ;;  %s1112_s27 = scalar_lea.sflag [#allocation10], %s1965_s29 }
  0x82   : > { %s1609_s9 = scalar_lea.vmem %s2092_s15, 512  ;;  %p2210_p12 = scmp.ne.s32.totalorder %s2196_s6, 0 }
  0x83   : > { %p1610_p10 = scmp.ne.s32.totalorder %s2092_s15, %s1609_s9  ;;  %s1739_s24 = smov [#allocation9]  }
  0x84   : > { %740 = vrot.lane.b32.xlu1 %v386_v3, %s1735_s28  ;;  %s1613_s30 = sshll.u32 %s1739_s24, 4  ;;  %s1614_s30 = int_to_ptr.vmem [resolvable:$false] %s1613_s30 }
  0x85   : > { %p1611_p1 = pnand %p1610_p10, %p2210_p12  ;;  %s1615_s26 = scalar_lea.vmem %s1614_s30, 1024 }
  0x86   : > { %p1616_p9 = scmp.lt.s32.totalorder %s2092_s15, %s1614_s30  ;;  %p1617_p6 = scmp.lt.s32.totalorder %s1615_s26, %s1609_s9 }
  0x87   : > { %p1612_p8 = pneg %p1611_p1 }
  0x88   : > { %919 = vrot.lane.b32.xlu1 %v387_v1, %s1736_s17  ;;  %p1618_p13 = por %p1617_p6, %p1616_p9 }
  0x8a   : > { %p1619_p11 = pnand %p1618_p13, %p1612_p8 }
  0x8c   : > { %916 = vrot.lane.b32.xlu1 %v386_v3, %s1736_s17 }
  0xee   : > { %v568_v19 = vpop.permute.xlu1 %567 }
  0xf2   : > { %v565_v21 = vpop.permute.xlu1 %564 }
  0xf6   : > { %v741_v23 = vpop.permute.xlu1 %740 }
  0xfa   : > { %v920_v26 = vpop.permute.xlu1 %919 }
  0xfe   : > { %v917_v27 = vpop.permute.xlu1 %916 }
 0x152   : > { %v462_v8 = vpop.f32.mrb[0].mxu0 }
 0x153   : > { %v466_v9 = vsel %vm383_vm2, %v462_v8, -10000.0  ;;  %v1381_v10 = vpop.f32.mrb[1].mxu0 }
 0x154   : > { %v473_v11 = vadd.f32 %v2004_v7, %v466_v9 }
 0x156   : > { %v474_v12 = vsel %vm389_vm1, %v473_v11, -inf }
 0x157   : > { %475 = vmax.xlane.f32.xlu0 %v474_v12 }
 0x1e4   : > { %v476_v13 = vpop.xlane.xlu0 %475 }
 0x1e5   : > { %v477_v14 = vsub.f32 %v473_v11, %v476_v13 }
 0x1e7   : > { %v478_v15 = vmul.f32 1.442695, %v477_v14 }
 0x1e9   : > { %1503 = vpow2.f32 %v478_v15 }
 0x1f3   : > { %v1504_v16 = vpop.eup %1503 }
 0x1f4   : > { %v480_v17 = vsel %vm389_vm1, %v1504_v16, 0.0 }
 0x1f5   : > { %481 = vadd.xlane.f32.xlu0 %v480_v17 }
 0x20b   : > { %743 = vrot.lane.b32.xlu0 %v387_v1, %s1735_s28 }
 0x282   : > { %v482_v20 = vpop.xlane.xlu0 %481 }
 0x283   : > { %1505 = vrcp.f32 %v482_v20 }
 0x286   : > { %v744_v25 = vpop.permute.xlu0 %743 }
 0x28d   : > { %v1506_v22 = vpop.eup %1505 }
 0x28e   : > { %v484_v24 = vmul.f32 %v1506_v22, %v1504_v16 }
 0x290   : > { %485 = vst.msk [vmem:[%s2024_s11] sm:$0xff] %vm389_vm1, %v484_v24  ;;  %1385 = vmatmul.mubr.msk.f32.vlgmr.msra.gmra.mrb[0].mxu1 %vm389_vm1, %v484_v24 }
 0x291   : > { %1388 = vmatpush3.xpose.msk.msra.mxu1 %vm389_vm1, %v568_v19  ;;  %1389 = vmatprep.mubr.msk.f32.mxu1 %vm1733_vm0, %v1732_v0 }
 0x292   : > { %1397 = vmatprep.subr.mxu1 %v1732_v0 }
 0x294   : > { %1390 = vmatmul.mubr.msk.f32.vlgmr.msra.gmra.mrb[2].mxu1 %vm389_vm1, %v565_v21 }
 0x295   : > { %1398 = vmatpush3.xpose.msk.msra.mxu1 %vm389_vm1, %v744_v25  ;;  %1399 = vmatprep.mubr.msk.f32.mxu1 %vm1733_vm0, %v1732_v0 }
 0x296   : > { %1407 = vmatprep.subr.mxu1 %v1732_v0 }
 0x298   : > { %1400 = vmatmul.mubr.msk.f32.vlgmr.msra.gmra.mrb[4].mxu1 %vm389_vm1, %v741_v23 }
 0x299   : > { %1408 = vmatpush3.xpose.msk.msra.mxu1 %vm389_vm1, %v920_v26  ;;  %1409 = vmatprep.mubr.msk.f32.mxu1 %vm1733_vm0, %v1732_v0 }
 0x29c   : > { %1410 = vmatmul.mubr.msk.f32.vlgmr.msra.gmra.mrb[6].mxu1 %vm389_vm1, %v917_v27 }
 0x363   : > { %v2043_v28 = vpop.f32.mrb[0].mxu1 }
 0x364   : > { %v1386_v29 = vpop.f32.mrb[1].mxu1 }
 0x367   : > { %v639_v30 = vpop.f32.mrb[2].mxu1 }
 0x368   : > { %v643_v31 = vsel %vm383_vm2, %v639_v30, -10000.0  ;;  %v1391_v32 = vpop.f32.mrb[3].mxu1 }
 0x369   : > { %v644_v33 = vadd.f32 %v2004_v7, %v643_v31 }
 0x36b   : > { %v815_v34 = vpop.f32.mrb[4].mxu1  ;;  %v645_v35 = vsel %vm389_vm1, %v644_v33, -inf }
 0x36c   : > { %v819_v36 = vsel %vm383_vm2, %v815_v34, -10000.0  ;;  %646 = vmax.xlane.f32.xlu1 %v645_v35  ;;  %v1401_v37 = vpop.f32.mrb[5].mxu1 }
 0x36d   : > { %v820_v38 = vadd.f32 %v2004_v7, %v819_v36 }
 0x36f   : > { %v991_v39 = vpop.f32.mrb[6].mxu1  ;;  %v821_v40 = vsel %vm389_vm1, %v820_v38, -inf }
 0x370   : > { %v995_v41 = vsel %vm383_vm2, %v991_v39, -10000.0  ;;  %822 = vmax.xlane.f32.xlu0 %v821_v40  ;;  %v1411_v42 = vpop.f32.mrb[7].mxu1 }
 0x371   : > { %v996_v43 = vadd.f32 %v2004_v7, %v995_v41 }
 0x373   : > { %v997_v44 = vsel %vm389_vm1, %v996_v43, -inf }
 0x374   : > { %998 = vmax.xlane.f32.xlu1 %v997_v44 }
 0x3f9   : > { %v647_v45 = vpop.xlane.xlu1 %646 }
 0x3fa   : > { %v648_v46 = vsub.f32 %v644_v33, %v647_v45 }
 0x3fc   : > { %v649_v47 = vmul.f32 1.442695, %v648_v46 }
 0x3fd   : > { %v823_v48 = vpop.xlane.xlu0 %822 }
 0x3fe   : > { %1507 = vpow2.f32 %v649_v47  ;;  %v824_v49 = vsub.f32 %v820_v38, %v823_v48 }
 0x400   : > { %v825_v50 = vmul.f32 1.442695, %v824_v49 }
 0x401   : > { %v999_v55 = vpop.xlane.xlu1 %998 }
 0x402   : > { %1509 = vpow2.f32 %v825_v50  ;;  %v1000_v56 = vsub.f32 %v996_v43, %v999_v55 }
 0x404   : > { %v1001_v57 = vmul.f32 1.442695, %v1000_v56 }
 0x406   : > { %1511 = vpow2.f32 %v1001_v57 }
 0x408   : > { %v1508_v51 = vpop.eup %1507 }
 0x409   : > { %v651_v52 = vsel %vm389_vm1, %v1508_v51, 0.0 }
 0x40a   : > { %652 = vadd.xlane.f32.xlu1 %v651_v52 }
 0x40c   : > { %v1510_v53 = vpop.eup %1509 }
 0x40d   : > { %v827_v54 = vsel %vm389_vm1, %v1510_v53, 0.0 }
 0x40e   : > { %828 = vadd.xlane.f32.xlu0 %v827_v54 }
 0x410   : > { %v1512_v58 = vpop.eup %1511 }
 0x411   : > { %v1003_v59 = vsel %vm389_vm1, %v1512_v58, 0.0 }
 0x41b   : > { %835 = vrot.lane.b32.xlu1 %v2018_v18, %s1735_s28 }
 0x424   : > { %659 = vrot.lane.b32.xlu0 %v2018_v18, %s1734_s25 }
 0x43f   : > { %1004 = vadd.xlane.f32.xlu1 %v1003_v59 }
 0x450   : > { %1011 = vrot.lane.b32.xlu1 %v2018_v18, %s1736_s17 }
 0x497   : > { %v653_v60 = vpop.xlane.xlu1 %652 }
 0x498   : > { %1513 = vrcp.f32 %v653_v60 }
 0x49b   : > { %v829_v61 = vpop.xlane.xlu0 %828  ;;  %v836_v2 = vpop.permute.xlu1 %835 }
 0x49c   : > { %1515 = vrcp.f32 %v829_v61 }
 0x49f   : > { %v660_v62 = vpop.permute.xlu0 %659 }
 0x4a0   : > { %1393 = vmatpush3.msra.mxu0 %v660_v62 }
 0x4a1   : > { %1402 = vmatprep.subr.mxu0 %v1732_v0 }
 0x4a2   : > { %v1514_v63 = vpop.eup %1513 }
 0x4a3   : > { %v655_v1 = vmul.f32 %v1514_v63, %v1508_v51 }
 0x4a5   : > { %1343 = vst.msk [vmem:[%s2024_s11 + $0x8] sm:$0xff] %vm389_vm1, %v655_v1  ;;  %1395 = vmatmul.mubr.msk.f32.vlgmr.msra.gmra.mrb[2].mxu0 %vm389_vm1, %v655_v1 }
 0x4a6   : > { %v1516_v3 = vpop.eup %1515  ;;  %1403 = vmatpush3.msra.mxu0 %v836_v2  ;;  %1404 = vmatprep.mubr.msk.f32.mxu0 %vm1733_vm0, %v1732_v0 }
 0x4a7   : > { %v831_v4 = vmul.f32 %v1516_v3, %v1510_v53  ;;  %1412 = vmatprep.subr.mxu0 %v1732_v0 }
 0x4a9   : > { %1347 = vst.msk [vmem:[%s2024_s11 + $0x10] sm:$0xff] %vm389_vm1, %v831_v4  ;;  %1405 = vmatmul.mubr.msk.f32.vlgmr.msra.gmra.mrb[4].mxu0 %vm389_vm1, %v831_v4 }
 0x4aa   : > { %1414 = vmatprep.mubr.msk.f32.mxu0 %vm1733_vm0, %v1732_v0 }
 0x4cc   : > { %v1005_v5 = vpop.xlane.xlu1 %1004 }
 0x4cd   : > { %1517 = vrcp.f32 %v1005_v5 }
 0x4d0   : > { %v1012_v6 = vpop.permute.xlu1 %1011 }
 0x4d1   : > { %1413 = vmatpush3.msra.mxu0 %v1012_v6 }
 0x4d7   : > { %v1518_v7 = vpop.eup %1517 }
 0x4d8   : > { %v1007_v8 = vmul.f32 %v1518_v7, %v1512_v58 }
 0x4da   : > { %1351 = vst.msk [vmem:[%s2024_s11 + $0x18] sm:$0xff] %vm389_vm1, %v1007_v8  ;;  %1415 = vmatmul.mubr.msk.f32.vlgmr.msra.gmra.mrb[6].mxu0 %vm389_vm1, %v1007_v8 }
 0x578   : > { %v731_v9 = vpop.f32.mrb[2].mxu0 }
 0x579   : > { %1088 = vrot.lane.b32.xlu0 %v731_v9, %s1737_s22  ;;  %v1396_v10 = vpop.f32.mrb[3].mxu0 }
 0x57c   : > { %v907_v0 = vpop.f32.mrb[4].mxu0 }
 0x57d   : > { %1092 = vrot.lane.b32.xlu1 %v907_v0, %s1738_s10  ;;  %v1406_v11 = vpop.f32.mrb[5].mxu0 }
 0x57e   : > { %1622 = shalt.err (!%p1619_p11)
}
 0x57f   : > { %s1623_s7 = scalar_lea.hbm %s2090_s12, 512  ;;  %s1627_s17 = scalar_lea.hbm %s2180_s5, 1024 }
 0x580   : > { %p1624_p2 = scmp.ne.s32.totalorder %s2090_s12, %s1623_s7  ;;  %p1628_p3 = scmp.lt.u32.totalorder %s2090_s12, %s2180_s5 }
 0x581   : > { %p1629_p0 = scmp.lt.u32.totalorder %s1627_s17, %s1623_s7  ;;  %p1631_p10 = scmp.lt.u32.totalorder %s1623_s7, %s2090_s12 }
 0x582   : > { %p1625_p5 = pnand %p1624_p2, %p2210_p12 }
 0x583   : > { %p1630_p4 = por %p1629_p0, %p1628_p3 }
 0x584   : > { %p1626_p7 = pneg %p1625_p5 }
 0x585   : > { %p1632_p1 = por %p1631_p10, %p1630_p4 }
 0x587   : > { %p1633_p8 = pnand %p1632_p1, %p1626_p7 }
 0x589   : > { %1636 = shalt.err (!%p1633_p8)
}
 0x58a   : > { %s1740_s11 = smov 128   ;;  %s1741_s10 = smov 24   ;;  %vm1100_vm3 = vcmask 130048   ;;  %vm1102_vm4 = vcmask 195584   ;;  %vm1104_vm5 = vcmask 261120  }
 0x58b   : > { %1424 = dma.vmem_to_hbm [thread:$0]  (%p2210_p12), %s2092_s15, 512, %s2090_s12, %s1112_s27, %s1740_s11, %s1740_s11, %s1737_s22  }
 0x58c   : > { %s1355_s13 = sshll.u32 %s1719_s21, 7  ;;  %s364_s8 = scalar_lea.vmem [#allocation8], %s1968_s16 }
 0x58d   : > { %s1127_s23 = sshll.u32 %s364_s8, 4  ;;  %s2126_s12 = scalar_lea.hbm %s2179_s4, %s1355_s13  ;;  %s2128_s23 = int_to_ptr.vmem [resolvable:$true] %s1127_s23 }
 0x58e   : > { %s1107_s21 = scalar_lea.sflag [#allocation4], %s1965_s29  ;;  %s1637_s16 = scalar_lea.vmem %s2128_s23, 128 }
 0x58f   : > { %p1638_p9 = scmp.ne.s32.totalorder %s2128_s23, %s1637_s16  ;;  %s1742_s27 = smov [#allocation8]  }
 0x590   : > { %s1641_s9 = sshll.u32 %s1742_s27, 4  ;;  %s1642_s9 = int_to_ptr.vmem [resolvable:$false] %s1641_s9 }
 0x591   : > { %p1639_p6 = pnand %p1638_p9, %p2210_p12  ;;  %s1643_s24 = scalar_lea.vmem %s1642_s9, 256 }
 0x592   : > { %p1644_p11 = scmp.lt.s32.totalorder %s2128_s23, %s1642_s9  ;;  %p1645_p2 = scmp.lt.s32.totalorder %s1643_s24, %s1637_s16 }
 0x593   : > { %p1640_p13 = pneg %p1639_p6 }
 0x594   : > { %p1646_p5 = por %p1645_p2, %p1644_p11 }
 0x596   : > { %p1647_p7 = pnand %p1646_p5, %p1640_p13 }
 0x5ad   : > { %v1083_v12 = vpop.f32.mrb[6].mxu0 }
 0x5ae   : > { %1096 = vrot.lane.b32.xlu0 %v1083_v12, %s1741_s10  ;;  %v1416_v13 = vpop.f32.mrb[7].mxu0 }
 0x5eb   : > { %v1089_v14 = vpop.permute.xlu0 %1088 }
 0x5ec   : > { %v1099_v16 = vsel %vm389_vm1, %v2043_v28, %v1089_v14 }
 0x5ef   : > { %v1093_v15 = vpop.permute.xlu1 %1092 }
 0x5f0   : > { %v1101_v17 = vsel %vm1100_vm3, %v1099_v16, %v1093_v15 }
 0x620   : > { %v1097_v18 = vpop.permute.xlu0 %1096 }
 0x621   : > { %v1103_v19 = vsel %vm1102_vm4, %v1101_v17, %v1097_v18 }
 0x622   : > { %1105 = vst.msk [vmem:[%s364_s8] sm:$0xff] %vm1104_vm5, %v1103_v19 }
 0x623   : > { %1650 = shalt.err (!%p1647_p7)
}
 0x624   : > { %s1651_s29 = scalar_lea.hbm %s2126_s12, 128  ;;  %s1655_s7 = scalar_lea.hbm %s2179_s4, 256 }
 0x625   : > { %p1652_p3 = scmp.ne.s32.totalorder %s2126_s12, %s1651_s29  ;;  %p1656_p10 = scmp.lt.u32.totalorder %s2126_s12, %s2179_s4 }
 0x626   : > { %p1657_p1 = scmp.lt.u32.totalorder %s1655_s7, %s1651_s29  ;;  %p1659_p9 = scmp.lt.u32.totalorder %s1651_s29, %s2126_s12 }
 0x627   : > { %p1653_p0 = pnand %p1652_p3, %p2210_p12 }
 0x628   : > { %p1658_p8 = por %p1657_p1, %p1656_p10 }
 0x629   : > { %p1654_p4 = pneg %p1653_p0 }
 0x62a   : > { %p1660_p6 = por %p1659_p9, %p1658_p8 }
 0x62c   : > { %p1661_p13 = pnand %p1660_p6, %p1654_p4 }
 0x62e   : > { %1664 = shalt.err (!%p1661_p13)
}
 0x62f   : > { %1423 = dma.vmem_to_hbm [thread:$0]  (%p2210_p12), %s2128_s23, 128, %s2126_s12, %s1107_s21  }
 0x630 PF: > { %s2211_s17 = sld [smem:[#allocation19_spill]]  ;;  %s2212_s14 = sld [smem:[#allocation16_spill]] }
 0x631   : > { %s1158_s1 = sand.u32 1, %s1707_s18  }
 0x632   : > { %s1159_s11 = scalar_lea.sflag [#allocation4], %s1158_s1 }
 0x636   : > { %p2213_p11 = scmp.ne.s32.totalorder %s2211_s17, 0  ;;  %p2214_p2 = scmp.ge.s32.totalorder %s2212_s14, 2 }
 0x638   : > { %p1438_p5 = pnand %p2214_p2, %p2213_p11 }
 0x63a   : > { %1698 = dma.done.wait (!%p1438_p5), %s1159_s11, 128  }
 0x63b   : > { %1700 = vsyncadd (!%p1438_p5), %s1159_s11, 4294967168  ;;  %s1168_s10 = scalar_lea.sflag [#allocation10], %s1158_s1 }
 0x63c   : > { %1702 = dma.done.wait (!%p1438_p5), %s1168_s10, 512  }
 0x63d   : > { %1704 = vsyncadd (!%p1438_p5), %s1168_s10, 4294966784  ;;  %s28_s23 = sadd.s32 1, %s2212_s14   ;;  %s2215_s6 = sld [smem:[#allocation18_spill]] }
 0x63e   : > { %p25_p7 = scmp.ge.s32.totalorder %s28_s23, 4   ;;  %s2216_s21 = sld [smem:[#allocation15_spill]] }
 0x63f   : > { %s2217_s22 = sld [smem:[#allocation17_spill]]  ;;  %s2218_s18 = smov %s1711_s19 }
 0x640   : > { %s2219_s19 = smov %s1715_s20  ;;  %27 = sbr.rel (!%p25_p7) target bundleno = 12 (0xc), region = 128 }
 0x643   : > { %s2220_s20 = smov %s2215_s6 }
 0x647   :  { %1173 = vsyncpa [#allocation3], 1 }
 0x648   :  { %1175 = vsyncpa [#allocation3 + $0x1], 1 }
 0x649   :  { %1176 = vsyncpa [#allocation6], 1 }
 0x64a   :  { %1178 = vsyncpa [#allocation6 + $0x1], 1 }
 0x64b   :  { %1179 = vsyncpa [#allocation4], 1 }
 0x64c   :  { %1181 = vsyncpa [#allocation4 + $0x1], 1 }
 0x64d   :  { %1182 = vsyncpa [#allocation10], 1 }
 0x64e   :  { %1184 = vsyncpa [#allocation10 + $0x1], 1 }

</bundles_post_ra>
